<compile_context>
chip_gen: v5e
topology: v5e:2x2
jax: 0.10.0
libtpu: 0.0.40
codegen_flags: <defaults>
</compile_context>

<pallas_src>
import functools

import jax
import jax.numpy as jnp
from jax import lax
from jax.experimental import pallas as pl
from jax.experimental.pallas import tpu as pltpu


def _disc_kernel(pre_ref,                 # (TB, BB, 4H) pre-projected stream
                 w_rmu_ref,               # (H, 2H)  [W_r_h | W_mu_h]
                 w_hh_ref,                # (H, H)   W_hhat_h
                 w_out_ref, b_out_ref,    # (H, 1), (1, 1)
                 out_ref,                 # (BB, 1)
                 h_ref):                  # VMEM scratch (BB, H)
    t_blk = pl.program_id(1)
    H = h_ref.shape[1]
    TB = pre_ref.shape[0]

    @pl.when(t_blk == 0)
    def _():
        h_ref[...] = jnp.zeros_like(h_ref)

    # Weights are loaded once per grid step (outside the unrolled time loop).
    w_rmu = w_rmu_ref[...]
    w_hh = w_hh_ref[...]

    # TODO(synk): nn.Dropout(0.2) is treated as identity (eval mode).
    def step(i, h):
        pre = pre_ref[i]                                   # (BB, 4H)
        # beta_t = exp(-relu(delta_t @ W_td + b_td))  (linear precomputed)
        beta = jnp.exp(-jnp.maximum(pre[:, :H], 0.0))
        h = beta * h
        # Fused r / mu gates: one (BB,H)@(H,2H) dot; x-side + bias precomputed.
        gates = jax.nn.sigmoid(
            jnp.dot(h, w_rmu, preferred_element_type=jnp.float32)
            + pre[:, H:3 * H])
        r = gates[:, :H]
        mu = gates[:, H:]
        h_hat = jnp.tanh(
            jnp.dot(r * h, w_hh, preferred_element_type=jnp.float32)
            + pre[:, 3 * H:])
        return (1.0 - mu) * h + mu * h_hat

    h = lax.fori_loop(0, TB, step, h_ref[...], unroll=True)
    h_ref[...] = h

    @pl.when(t_blk == pl.num_programs(1) - 1)
    def _():
        out_ref[...] = (
            jnp.dot(jnp.maximum(h, 0.0), w_out_ref[...],
                    preferred_element_type=jnp.float32)
            + b_out_ref[...])


def e2egan_discriminator(x, mask, delta, params, *,
                         batch_block=None, time_block=None):
    """x, delta: (B, T, D). mask is unused (as in the PyTorch forward)."""
    del mask  # unused by the reference forward
    B, T, D = x.shape
    H = params["w_td"].shape[1]

    if batch_block is None:
        batch_block = B if B <= 8 else 8
    if time_block is None:
        time_block = T if T <= 8 else 8
    assert B % batch_block == 0, "batch must divide into batch blocks"
    assert T % time_block == 0, "time must divide into time blocks"
    assert batch_block == B or batch_block % 8 == 0

    # ---- hoisted, h-independent projections: one batched GEMM per stream ----
    #   pre[..., 0:H]    = delta @ W_td          + b_td    -> beta (exp(-relu))
    #   pre[..., H:2H]   = x @ W_r[H:,:]         + b_r
    #   pre[..., 2H:3H]  = x @ W_mu[H:,:]        + b_mu
    #   pre[..., 3H:4H]  = x @ W_hhat[H:,:]      + b_h
    # emitted directly in (T, B, 4H) layout (lane-dense sequence stream).
    w_x = jnp.concatenate(
        [params["w_r"][H:], params["w_mu"][H:], params["w_h"][H:]], axis=1)
    b_x = jnp.concatenate(
        [params["b_r"], params["b_mu"], params["b_h"]], axis=1)
    pre_td = jnp.einsum("btd,dh->tbh", delta, params["w_td"]) + params["b_td"]
    pre_x = jnp.einsum("btd,dh->tbh", x, w_x) + b_x
    pre = jnp.concatenate([pre_td, pre_x], axis=-1)           # (T, B, 4H)

    # h-side weights, pre-split / pre-fused so the kernel never slices tiles.
    w_rmu = jnp.concatenate([params["w_r"][:H], params["w_mu"][:H]], axis=1)
    w_hh = params["w_h"][:H]

    bb, tb = batch_block, time_block
    grid = (B // bb, T // tb)

    seq_spec = pl.BlockSpec((tb, bb, 4 * H), lambda b, t: (t, b, 0))
    full = lambda shape: pl.BlockSpec(shape, lambda b, t: tuple(0 for _ in shape))

    return pl.pallas_call(
        _disc_kernel,
        out_shape=jax.ShapeDtypeStruct((B, 1), jnp.float32),
        grid_spec=pltpu.PrefetchScalarGridSpec(
            num_scalar_prefetch=0,
            grid=grid,
            in_specs=[
                seq_spec,                         # pre-projected activations
                full((H, 2 * H)),                 # fused [W_r_h | W_mu_h]
                full((H, H)),                     # W_hhat_h
                full((H, 1)), full((1, 1)),       # output linear
            ],
            out_specs=pl.BlockSpec((bb, 1), lambda b, t: (b, 0)),
            scratch_shapes=[pltpu.VMEM((bb, H), jnp.float32)],
        ),
        compiler_params=pltpu.CompilerParams(
            # batch blocks are independent (megacore-shardable on v7x);
            # the time axis is a serial recurrence.
            dimension_semantics=("parallel", "arbitrary")),
    )(pre, w_rmu, w_hh, params["w_out"], params["b_out"])


def reference_forward(x, delta, params):
    """Pure-JAX replica of the PyTorch forward (eval mode)."""
    B, T, D = x.shape
    H = params["w_td"].shape[1]
    h = jnp.zeros((B, H), jnp.float32)
    for t in range(T):
        x_t = x[:, t, :]
        d_t = delta[:, t, :]
        beta = jnp.exp(-jnp.maximum(d_t @ params["w_td"] + params["b_td"], 0.0))
        h = beta * h
        temp = jnp.concatenate([h, x_t], axis=1)
        r = jax.nn.sigmoid(temp @ params["w_r"] + params["b_r"])
        mu = jax.nn.sigmoid(temp @ params["w_mu"] + params["b_mu"])
        temp2 = jnp.concatenate([r * h, x_t], axis=1)
        h_hat = jnp.tanh(temp2 @ params["w_h"] + params["b_h"])
        h = (1.0 - mu) * h + mu * h_hat
    return jnp.maximum(h, 0.0) @ params["w_out"] + params["b_out"]


def init_params(key, input_dim, hidden_dim):
    """Linear weights stored pre-transposed as (in_features, out_features)."""
    D, H = input_dim, hidden_dim
    ks = jax.random.split(key, 10)

    def lin(kw, kb, fan_in, fan_out):
        bound = 1.0 / jnp.sqrt(fan_in)
        w = jax.random.uniform(kw, (fan_in, fan_out), jnp.float32, -bound, bound)
        b = jax.random.uniform(kb, (1, fan_out), jnp.float32, -bound, bound)
        return w, b

    w_td, b_td = lin(ks[0], ks[1], D, H)
    w_mu, b_mu = lin(ks[2], ks[3], H + D, H)
    w_r, b_r = lin(ks[4], ks[5], H + D, H)
    w_h, b_h = lin(ks[6], ks[7], H + D, H)
    w_out, b_out = lin(ks[8], ks[9], H, 1)
    return dict(w_td=w_td, b_td=b_td, w_mu=w_mu, b_mu=b_mu,
                w_r=w_r, b_r=b_r, w_h=w_h, b_h=b_h,
                w_out=w_out, b_out=b_out)


if __name__ == "__main__":
    # Small shapes, chosen so the grid has >1 batch block and >1 time chunk
    # (exercises the hidden-state carry across grid steps).
    B, T, D, H = 16, 16, 16, 32
    key = jax.random.PRNGKey(0)
    k_x, k_d, k_m, k_p = jax.random.split(key, 4)

    x = jax.random.normal(k_x, (B, T, D), jnp.float32)
    delta = jax.random.uniform(k_d, (B, T, D), jnp.float32)
    mask = (jax.random.uniform(k_m, (B, T, D)) > 0.3).astype(jnp.float32)
    params = init_params(k_p, D, H)

    fwd = jax.jit(functools.partial(e2egan_discriminator,
                                    batch_block=8, time_block=4))
    out = fwd(x, mask, delta, params)
    out = jax.block_until_ready(out)

    ref = reference_forward(x, delta, params)
    assert out.shape == (B, 1)
    assert jnp.allclose(out, ref, rtol=1e-4, atol=1e-4), (out, ref)

    print("KERNEL_OK")
</pallas_src>

<mosaic_0001>
module attributes {stable_mosaic.version = 11 : i64} {
  func.func @_disc_kernel(%arg0: i32, %arg1: i32, %arg2: memref<4x8x128xf32, #tpu.memory_space<vmem>>, %arg3: memref<32x64xf32, #tpu.memory_space<vmem>>, %arg4: memref<32x32xf32, #tpu.memory_space<vmem>>, %arg5: memref<32x1xf32, #tpu.memory_space<vmem>>, %arg6: memref<1x1xf32, #tpu.memory_space<vmem>>, %arg7: memref<8x1xf32, #tpu.memory_space<vmem>>, %arg8: memref<8x32xf32, #tpu.memory_space<vmem>>) attributes {dimension_semantics = [#tpu.dimension_semantics<parallel>, #tpu.dimension_semantics<arbitrary>], iteration_bounds = array<i64: 2, 4>, scalar_prefetch = 0 : i64, scratch_operands = 1 : i64, tpu.core_type = #tpu.core_type<tc>, window_params = [{transform_indices = @transform_0, window_bounds = array<i64: 4, 8, 128>}, {pipeline_mode = #tpu.pipeline_mode<synchronous>, transform_indices = @transform_1, window_bounds = array<i64: 32, 64>}, {pipeline_mode = #tpu.pipeline_mode<synchronous>, transform_indices = @transform_2, window_bounds = array<i64: 32, 32>}, {pipeline_mode = #tpu.pipeline_mode<synchronous>, transform_indices = @transform_3, window_bounds = array<i64: 32, 1>}, {pipeline_mode = #tpu.pipeline_mode<synchronous>, transform_indices = @transform_4, window_bounds = array<i64: 1, 1>}, {transform_indices = @transform_5, window_bounds = array<i64: 8, 1>}]} {
    %c0_i32 = arith.constant 0 : i32
    %0 = arith.cmpi eq, %arg1, %c0_i32 : i32
    %1 = arith.extui %0 : i1 to i32
    %c0_i32_0 = arith.constant 0 : i32
    %2 = arith.cmpi ne, %1, %c0_i32_0 : i32
    scf.if %2 {
      %cst_42 = arith.constant 0.000000e+00 : f32
      %130 = vector.broadcast %cst_42 : f32 to vector<8x32xf32>
      %c0_43 = arith.constant 0 : index
      %c0_44 = arith.constant 0 : index
      %131 = vector.load %arg8[%c0_43, %c0_44] : memref<8x32xf32, #tpu.memory_space<vmem>>, vector<8x32xf32>
      tpu.vector_store %arg8[%c0_43, %c0_44], %130 {strides = array<i32>} : memref<8x32xf32, #tpu.memory_space<vmem>>, vector<8x32xf32>,
    } else {
    }
    %c0 = arith.constant 0 : index
    %c0_1 = arith.constant 0 : index
    %3 = vector.load %arg3[%c0, %c0_1] : memref<32x64xf32, #tpu.memory_space<vmem>>, vector<32x64xf32>
    %c0_2 = arith.constant 0 : index
    %c0_3 = arith.constant 0 : index
    %4 = vector.load %arg4[%c0_2, %c0_3] : memref<32x32xf32, #tpu.memory_space<vmem>>, vector<32x32xf32>
    %c0_4 = arith.constant 0 : index
    %c0_5 = arith.constant 0 : index
    %5 = vector.load %arg8[%c0_4, %c0_5] : memref<8x32xf32, #tpu.memory_space<vmem>>, vector<8x32xf32>
    %c0_i32_6 = arith.constant 0 : i32
    %6 = arith.index_cast %c0_i32_6 : i32 to index
    %c0_7 = arith.constant 0 : index
    %c0_8 = arith.constant 0 : index
    %7 = vector.load %arg2[%6, %c0_7, %c0_8] : memref<4x8x128xf32, #tpu.memory_space<vmem>>, vector<1x8x128xf32>
    %8 = vector.shape_cast %7 : vector<1x8x128xf32> to vector<8x128xf32>
    %9 = vector.extract_strided_slice %8 {offsets = [0, 0], sizes = [8, 32], strides = [1, 1]} : vector<8x128xf32> to vector<8x32xf32>
    %cst = arith.constant 0.000000e+00 : f32
    %10 = vector.broadcast %cst : f32 to vector<8x32xf32>
    %11 = arith.maximumf %9, %10 : vector<8x32xf32>
    %cst_9 = arith.constant 0.000000e+00 : f32
    %12 = vector.broadcast %cst_9 : f32 to vector<8x32xf32>
    %13 = arith.subf %12, %11 : vector<8x32xf32>
    %14 = math.exp %13 : vector<8x32xf32>
    %15 = arith.mulf %14, %5 : vector<8x32xf32>
    %cst_10 = arith.constant dense<0.000000e+00> : vector<8x64xf32>
    %16 = tpu.matmul %15, %3, %cst_10 {dimension_numbers = #tpu.dot_dimension_numbers<[1], [0], [0], [1], [0, 0, 1, 1], [], []>} : vector<8x32xf32>, vector<32x64xf32>, vector<8x64xf32> -> vector<8x64xf32>
    %17 = vector.extract_strided_slice %8 {offsets = [0, 32], sizes = [8, 64], strides = [1, 1]} : vector<8x128xf32> to vector<8x64xf32>
    %18 = arith.addf %16, %17 : vector<8x64xf32>
    %19 = arith.negf %18 : vector<8x64xf32>
    %20 = math.exp %19 : vector<8x64xf32>
    %cst_11 = arith.constant 1.000000e+00 : f32
    %21 = vector.broadcast %cst_11 : f32 to vector<8x64xf32>
    %22 = arith.addf %21, %20 : vector<8x64xf32>
    %23 = arith.divf %21, %22 : vector<8x64xf32>
    %24 = vector.extract_strided_slice %23 {offsets = [0, 0], sizes = [8, 32], strides = [1, 1]} : vector<8x64xf32> to vector<8x32xf32>
    %25 = vector.extract_strided_slice %23 {offsets = [0, 32], sizes = [8, 32], strides = [1, 1]} : vector<8x64xf32> to vector<8x32xf32>
    %26 = arith.mulf %24, %15 : vector<8x32xf32>
    %cst_12 = arith.constant dense<0.000000e+00> : vector<8x32xf32>
    %27 = tpu.matmul %26, %4, %cst_12 {dimension_numbers = #tpu.dot_dimension_numbers<[1], [0], [0], [1], [0, 0, 1, 1], [], []>} : vector<8x32xf32>, vector<32x32xf32>, vector<8x32xf32> -> vector<8x32xf32>
    %28 = vector.extract_strided_slice %8 {offsets = [0, 96], sizes = [8, 32], strides = [1, 1]} : vector<8x128xf32> to vector<8x32xf32>
    %29 = arith.addf %27, %28 : vector<8x32xf32>
    %30 = math.tanh %29 : vector<8x32xf32>
    %cst_13 = arith.constant 1.000000e+00 : f32
    %31 = vector.broadcast %cst_13 : f32 to vector<8x32xf32>
    %32 = arith.subf %31, %25 : vector<8x32xf32>
    %33 = arith.mulf %32, %15 : vector<8x32xf32>
    %34 = arith.mulf %25, %30 : vector<8x32xf32>
    %35 = arith.addf %33, %34 : vector<8x32xf32>
    %c1_i32 = arith.constant 1 : i32
    %36 = arith.index_cast %c1_i32 : i32 to index
    %c0_14 = arith.constant 0 : index
    %c0_15 = arith.constant 0 : index
    %37 = vector.load %arg2[%36, %c0_14, %c0_15] : memref<4x8x128xf32, #tpu.memory_space<vmem>>, vector<1x8x128xf32>
    %38 = vector.shape_cast %37 : vector<1x8x128xf32> to vector<8x128xf32>
    %39 = vector.extract_strided_slice %38 {offsets = [0, 0], sizes = [8, 32], strides = [1, 1]} : vector<8x128xf32> to vector<8x32xf32>
    %cst_16 = arith.constant 0.000000e+00 : f32
    %40 = vector.broadcast %cst_16 : f32 to vector<8x32xf32>
    %41 = arith.maximumf %39, %40 : vector<8x32xf32>
    %cst_17 = arith.constant 0.000000e+00 : f32
    %42 = vector.broadcast %cst_17 : f32 to vector<8x32xf32>
    %43 = arith.subf %42, %41 : vector<8x32xf32>
    %44 = math.exp %43 : vector<8x32xf32>
    %45 = arith.mulf %44, %35 : vector<8x32xf32>
    %cst_18 = arith.constant dense<0.000000e+00> : vector<8x64xf32>
    %46 = tpu.matmul %45, %3, %cst_18 {dimension_numbers = #tpu.dot_dimension_numbers<[1], [0], [0], [1], [0, 0, 1, 1], [], []>} : vector<8x32xf32>, vector<32x64xf32>, vector<8x64xf32> -> vector<8x64xf32>
    %47 = vector.extract_strided_slice %38 {offsets = [0, 32], sizes = [8, 64], strides = [1, 1]} : vector<8x128xf32> to vector<8x64xf32>
    %48 = arith.addf %46, %47 : vector<8x64xf32>
    %49 = arith.negf %48 : vector<8x64xf32>
    %50 = math.exp %49 : vector<8x64xf32>
    %cst_19 = arith.constant 1.000000e+00 : f32
    %51 = vector.broadcast %cst_19 : f32 to vector<8x64xf32>
    %52 = arith.addf %51, %50 : vector<8x64xf32>
    %53 = arith.divf %51, %52 : vector<8x64xf32>
    %54 = vector.extract_strided_slice %53 {offsets = [0, 0], sizes = [8, 32], strides = [1, 1]} : vector<8x64xf32> to vector<8x32xf32>
    %55 = vector.extract_strided_slice %53 {offsets = [0, 32], sizes = [8, 32], strides = [1, 1]} : vector<8x64xf32> to vector<8x32xf32>
    %56 = arith.mulf %54, %45 : vector<8x32xf32>
    %cst_20 = arith.constant dense<0.000000e+00> : vector<8x32xf32>
    %57 = tpu.matmul %56, %4, %cst_20 {dimension_numbers = #tpu.dot_dimension_numbers<[1], [0], [0], [1], [0, 0, 1, 1], [], []>} : vector<8x32xf32>, vector<32x32xf32>, vector<8x32xf32> -> vector<8x32xf32>
    %58 = vector.extract_strided_slice %38 {offsets = [0, 96], sizes = [8, 32], strides = [1, 1]} : vector<8x128xf32> to vector<8x32xf32>
    %59 = arith.addf %57, %58 : vector<8x32xf32>
    %60 = math.tanh %59 : vector<8x32xf32>
    %cst_21 = arith.constant 1.000000e+00 : f32
    %61 = vector.broadcast %cst_21 : f32 to vector<8x32xf32>
    %62 = arith.subf %61, %55 : vector<8x32xf32>
    %63 = arith.mulf %62, %45 : vector<8x32xf32>
    %64 = arith.mulf %55, %60 : vector<8x32xf32>
    %65 = arith.addf %63, %64 : vector<8x32xf32>
    %c2_i32 = arith.constant 2 : i32
    %66 = arith.index_cast %c2_i32 : i32 to index
    %c0_22 = arith.constant 0 : index
    %c0_23 = arith.constant 0 : index
    %67 = vector.load %arg2[%66, %c0_22, %c0_23] : memref<4x8x128xf32, #tpu.memory_space<vmem>>, vector<1x8x128xf32>
    %68 = vector.shape_cast %67 : vector<1x8x128xf32> to vector<8x128xf32>
    %69 = vector.extract_strided_slice %68 {offsets = [0, 0], sizes = [8, 32], strides = [1, 1]} : vector<8x128xf32> to vector<8x32xf32>
    %cst_24 = arith.constant 0.000000e+00 : f32
    %70 = vector.broadcast %cst_24 : f32 to vector<8x32xf32>
    %71 = arith.maximumf %69, %70 : vector<8x32xf32>
    %cst_25 = arith.constant 0.000000e+00 : f32
    %72 = vector.broadcast %cst_25 : f32 to vector<8x32xf32>
    %73 = arith.subf %72, %71 : vector<8x32xf32>
    %74 = math.exp %73 : vector<8x32xf32>
    %75 = arith.mulf %74, %65 : vector<8x32xf32>
    %cst_26 = arith.constant dense<0.000000e+00> : vector<8x64xf32>
    %76 = tpu.matmul %75, %3, %cst_26 {dimension_numbers = #tpu.dot_dimension_numbers<[1], [0], [0], [1], [0, 0, 1, 1], [], []>} : vector<8x32xf32>, vector<32x64xf32>, vector<8x64xf32> -> vector<8x64xf32>
    %77 = vector.extract_strided_slice %68 {offsets = [0, 32], sizes = [8, 64], strides = [1, 1]} : vector<8x128xf32> to vector<8x64xf32>
    %78 = arith.addf %76, %77 : vector<8x64xf32>
    %79 = arith.negf %78 : vector<8x64xf32>
    %80 = math.exp %79 : vector<8x64xf32>
    %cst_27 = arith.constant 1.000000e+00 : f32
    %81 = vector.broadcast %cst_27 : f32 to vector<8x64xf32>
    %82 = arith.addf %81, %80 : vector<8x64xf32>
    %83 = arith.divf %81, %82 : vector<8x64xf32>
    %84 = vector.extract_strided_slice %83 {offsets = [0, 0], sizes = [8, 32], strides = [1, 1]} : vector<8x64xf32> to vector<8x32xf32>
    %85 = vector.extract_strided_slice %83 {offsets = [0, 32], sizes = [8, 32], strides = [1, 1]} : vector<8x64xf32> to vector<8x32xf32>
    %86 = arith.mulf %84, %75 : vector<8x32xf32>
    %cst_28 = arith.constant dense<0.000000e+00> : vector<8x32xf32>
    %87 = tpu.matmul %86, %4, %cst_28 {dimension_numbers = #tpu.dot_dimension_numbers<[1], [0], [0], [1], [0, 0, 1, 1], [], []>} : vector<8x32xf32>, vector<32x32xf32>, vector<8x32xf32> -> vector<8x32xf32>
    %88 = vector.extract_strided_slice %68 {offsets = [0, 96], sizes = [8, 32], strides = [1, 1]} : vector<8x128xf32> to vector<8x32xf32>
    %89 = arith.addf %87, %88 : vector<8x32xf32>
    %90 = math.tanh %89 : vector<8x32xf32>
    %cst_29 = arith.constant 1.000000e+00 : f32
    %91 = vector.broadcast %cst_29 : f32 to vector<8x32xf32>
    %92 = arith.subf %91, %85 : vector<8x32xf32>
    %93 = arith.mulf %92, %75 : vector<8x32xf32>
    %94 = arith.mulf %85, %90 : vector<8x32xf32>
    %95 = arith.addf %93, %94 : vector<8x32xf32>
    %c3_i32 = arith.constant 3 : i32
    %96 = arith.index_cast %c3_i32 : i32 to index
    %c0_30 = arith.constant 0 : index
    %c0_31 = arith.constant 0 : index
    %97 = vector.load %arg2[%96, %c0_30, %c0_31] : memref<4x8x128xf32, #tpu.memory_space<vmem>>, vector<1x8x128xf32>
    %98 = vector.shape_cast %97 : vector<1x8x128xf32> to vector<8x128xf32>
    %99 = vector.extract_strided_slice %98 {offsets = [0, 0], sizes = [8, 32], strides = [1, 1]} : vector<8x128xf32> to vector<8x32xf32>
    %cst_32 = arith.constant 0.000000e+00 : f32
    %100 = vector.broadcast %cst_32 : f32 to vector<8x32xf32>
    %101 = arith.maximumf %99, %100 : vector<8x32xf32>
    %cst_33 = arith.constant 0.000000e+00 : f32
    %102 = vector.broadcast %cst_33 : f32 to vector<8x32xf32>
    %103 = arith.subf %102, %101 : vector<8x32xf32>
    %104 = math.exp %103 : vector<8x32xf32>
    %105 = arith.mulf %104, %95 : vector<8x32xf32>
    %cst_34 = arith.constant dense<0.000000e+00> : vector<8x64xf32>
    %106 = tpu.matmul %105, %3, %cst_34 {dimension_numbers = #tpu.dot_dimension_numbers<[1], [0], [0], [1], [0, 0, 1, 1], [], []>} : vector<8x32xf32>, vector<32x64xf32>, vector<8x64xf32> -> vector<8x64xf32>
    %107 = vector.extract_strided_slice %98 {offsets = [0, 32], sizes = [8, 64], strides = [1, 1]} : vector<8x128xf32> to vector<8x64xf32>
    %108 = arith.addf %106, %107 : vector<8x64xf32>
    %109 = arith.negf %108 : vector<8x64xf32>
    %110 = math.exp %109 : vector<8x64xf32>
    %cst_35 = arith.constant 1.000000e+00 : f32
    %111 = vector.broadcast %cst_35 : f32 to vector<8x64xf32>
    %112 = arith.addf %111, %110 : vector<8x64xf32>
    %113 = arith.divf %111, %112 : vector<8x64xf32>
    %114 = vector.extract_strided_slice %113 {offsets = [0, 0], sizes = [8, 32], strides = [1, 1]} : vector<8x64xf32> to vector<8x32xf32>
    %115 = vector.extract_strided_slice %113 {offsets = [0, 32], sizes = [8, 32], strides = [1, 1]} : vector<8x64xf32> to vector<8x32xf32>
    %116 = arith.mulf %114, %105 : vector<8x32xf32>
    %cst_36 = arith.constant dense<0.000000e+00> : vector<8x32xf32>
    %117 = tpu.matmul %116, %4, %cst_36 {dimension_numbers = #tpu.dot_dimension_numbers<[1], [0], [0], [1], [0, 0, 1, 1], [], []>} : vector<8x32xf32>, vector<32x32xf32>, vector<8x32xf32> -> vector<8x32xf32>
    %118 = vector.extract_strided_slice %98 {offsets = [0, 96], sizes = [8, 32], strides = [1, 1]} : vector<8x128xf32> to vector<8x32xf32>
    %119 = arith.addf %117, %118 : vector<8x32xf32>
    %120 = math.tanh %119 : vector<8x32xf32>
    %cst_37 = arith.constant 1.000000e+00 : f32
    %121 = vector.broadcast %cst_37 : f32 to vector<8x32xf32>
    %122 = arith.subf %121, %115 : vector<8x32xf32>
    %123 = arith.mulf %122, %105 : vector<8x32xf32>
    %124 = arith.mulf %115, %120 : vector<8x32xf32>
    %125 = arith.addf %123, %124 : vector<8x32xf32>
    %c4_i32 = arith.constant 4 : i32
    %c0_38 = arith.constant 0 : index
    %c0_39 = arith.constant 0 : index
    %126 = vector.load %arg8[%c0_38, %c0_39] : memref<8x32xf32, #tpu.memory_space<vmem>>, vector<8x32xf32>
    tpu.vector_store %arg8[%c0_38, %c0_39], %125 {strides = array<i32>} : memref<8x32xf32, #tpu.memory_space<vmem>>, vector<8x32xf32>,
    %c3_i32_40 = arith.constant 3 : i32
    %127 = arith.cmpi eq, %arg1, %c3_i32_40 : i32
    %128 = arith.extui %127 : i1 to i32
    %c0_i32_41 = arith.constant 0 : i32
    %129 = arith.cmpi ne, %128, %c0_i32_41 : i32
    scf.if %129 {
      %cst_42 = arith.constant 0.000000e+00 : f32
      %130 = vector.broadcast %cst_42 : f32 to vector<8x32xf32>
      %131 = arith.maximumf %125, %130 : vector<8x32xf32>
      %c0_43 = arith.constant 0 : index
      %c0_44 = arith.constant 0 : index
      %132 = vector.load %arg5[%c0_43, %c0_44] : memref<32x1xf32, #tpu.memory_space<vmem>>, vector<32x1xf32>
      %cst_45 = arith.constant dense<0.000000e+00> : vector<8x1xf32>
      %133 = tpu.matmul %131, %132, %cst_45 {dimension_numbers = #tpu.dot_dimension_numbers<[1], [0], [0], [1], [0, 0, 1, 1], [], []>} : vector<8x32xf32>, vector<32x1xf32>, vector<8x1xf32> -> vector<8x1xf32>
      %c0_46 = arith.constant 0 : index
      %c0_47 = arith.constant 0 : index
      %134 = vector.load %arg6[%c0_46, %c0_47] : memref<1x1xf32, #tpu.memory_space<vmem>>, vector<1x1xf32>
      %135 = vector.broadcast %134 : vector<1x1xf32> to vector<8x1xf32>
      %136 = arith.addf %133, %135 : vector<8x1xf32>
      %c0_48 = arith.constant 0 : index
      %c0_49 = arith.constant 0 : index
      %137 = vector.load %arg7[%c0_48, %c0_49] : memref<8x1xf32, #tpu.memory_space<vmem>>, vector<8x1xf32>
      tpu.vector_store %arg7[%c0_48, %c0_49], %136 {strides = array<i32>} : memref<8x1xf32, #tpu.memory_space<vmem>>, vector<8x1xf32>,
    } else {
    }
    return
  }
  func.func @transform_0(%arg0: i32, %arg1: i32) -> (i32, i32, i32) {
    %c0_i32 = arith.constant 0 : i32
    %c0_i32_0 = arith.constant 0 : i32
    return %arg1, %arg0, %c0_i32 : i32, i32, i32
  }
  func.func @transform_1(%arg0: i32, %arg1: i32) -> (i32, i32) {
    %c0_i32 = arith.constant 0 : i32
    %c0_i32_0 = arith.constant 0 : i32
    %c0_i32_1 = arith.constant 0 : i32
    return %c0_i32, %c0_i32_0 : i32, i32
  }
  func.func @transform_2(%arg0: i32, %arg1: i32) -> (i32, i32) {
    %c0_i32 = arith.constant 0 : i32
    %c0_i32_0 = arith.constant 0 : i32
    %c0_i32_1 = arith.constant 0 : i32
    return %c0_i32, %c0_i32_0 : i32, i32
  }
  func.func @transform_3(%arg0: i32, %arg1: i32) -> (i32, i32) {
    %c0_i32 = arith.constant 0 : i32
    %c0_i32_0 = arith.constant 0 : i32
    %c0_i32_1 = arith.constant 0 : i32
    return %c0_i32, %c0_i32_0 : i32, i32
  }
  func.func @transform_4(%arg0: i32, %arg1: i32) -> (i32, i32) {
    %c0_i32 = arith.constant 0 : i32
    %c0_i32_0 = arith.constant 0 : i32
    %c0_i32_1 = arith.constant 0 : i32
    return %c0_i32, %c0_i32_0 : i32, i32
  }
  func.func @transform_5(%arg0: i32, %arg1: i32) -> (i32, i32) {
    %c0_i32 = arith.constant 0 : i32
    %c0_i32_0 = arith.constant 0 : i32
    return %arg0, %c0_i32 : i32, i32
  }
}

</mosaic_0001>

<bundles_post_ra>
// kernel: e2egan_discriminator.1
= control target key start
LH: loop header
LB: loop body
LE: loop exit
PB: predicated region body
PF: predicated region fallthrough
CT: control target
= control target key end

     0   :  { %s1186_s0 = inlined_call_operand.vmem [shape: f32[16,16,128], index: 0, kind: input, shape index: {}]   ;;  %s1187_s1 = inlined_call_operand.vmem [shape: f32[32,64], index: 1, kind: input, shape index: {}]   ;;  %s1188_s2 = inlined_call_operand.vmem [shape: f32[32,32], index: 2, kind: input, shape index: {}]   ;;  %s1189_s3 = inlined_call_operand.vmem [shape: f32[32,1], index: 3, kind: input, shape index: {}]   ;;  %s1190_s4 = inlined_call_operand.<no memory space> [shape: f32[1,1], index: 4, kind: input, shape index: {}]   ;;  %s1191_s5 = inlined_call_operand.vmem [shape: f32[16,1], index: 5, kind: output, shape index: {}]  }
   0x1   :  { %v10_v0 = vstv %s1190_s4 }
   0x2   :  { %11 = vst [vmem:[#allocation3] sm:$0x1] %v10_v0 }
   0x3   :  { %s1020_s20 = smov 0   ;;  %s1022_s21 = smov 0  }
   0x4   :  { %s1024_s22 = smov 0   ;;  %s1026_s23 = smov 0  }
   0x5   :  { %s1028_s24 = smov 0   ;;  %s1030_s25 = smov 0  }
   0x6   :  { %s1032_s26 = smov 0  }
   0x7 LB: > { %s26_s4 = sadd.s32 1, %s973_s24  ;;  %s29_s27 = sadd.s32 1, %s977_s25  ;;  %s981_s26 = sphi %s1032_s26, %s17_s26   ;;  %s977_s25 = sphi %s1030_s25, %s1197_s25   ;;  %s973_s24 = sphi %s1028_s24, %s1196_s24   ;;  %s969_s23 = sphi %s1026_s23, %s1195_s23   ;;  %s965_s22 = sphi %s1024_s22, %s1194_s22   ;;  %s961_s21 = sphi %s1022_s21, %s1193_s21   ;;  %s957_s20 = sphi %s1020_s20, %s1192_s20  }
   0x8   : > { %p27_p0 = scmp.ge.s32.totalorder %s26_s4, 4  ;;  %p45_p1 = scmp.ne.s32.totalorder %s961_s21, %s957_s20 }
   0x9   : > { %p46_p2 = scmp.eq.s32.totalorder %s981_s26, 0  ;;  %s38_s6 = sadd.s32 1, %s961_s21 }
   0xa   : > { %s1199_s4 = smov (%p27_p0, %s26_s4), 0  ;;  %s1201_s27 = smov (!%p27_p0, %s29_s27), %s977_s25 }
   0xb   : > { %p47_p3 = por %p46_p2, %p45_p1  ;;  %p31_p4 = scmp.ge.s32.totalorder %s1201_s27, 2 }
   0xc   : > { %s33_s28 = ssub.s32 %s973_s24, %s1199_s4  ;;  %p805_p6 = scmp.ge.s32.totalorder %s981_s26, 8 }
   0xd   : > { %s1203_s27 = smov (%p31_p4, %s1201_s27), 0 }
   0xe   : > { %s34_s29 = ssub.s32 %s977_s25, %s1203_s27  ;;  %193 = sbr.rel (%p805_p6) target bundleno = 29 (0x1d), region = 32 }
   0xf   : > { %s35_s30 = sor.u32 %s34_s29, %s33_s28 }
  0x10   : > { %p36_p5 = scmp.eq.s32.totalorder %s35_s30, 0 }
  0x12   : > { %s1071_s7 = scalar_select %p36_p5, %s961_s21, %s38_s6  }
  0x13   : > { %196 = sbr.rel (!%p47_p3) target bundleno = 29 (0x1d), region = 36  ;;  %s198_s8 = sand.u32 (%p47_p3), 1, %s961_s21  }
  0x14   : > { %s833_s9 = sshll.u32 (%p47_p3), %s973_s24, 3  ;;  %s806_s10 = sshll.u32 (%p47_p3), %s198_s8, 5 }
  0x15   : > { %s203_s11 = sadd.s32 (%p47_p3), %s977_s25, %s833_s9  ;;  %s200_s16 = scalar_lea.vmem (%p47_p3), [#allocation4], %s806_s10 }
  0x16   : > { %s809_s12 = sshll.u32 (%p47_p3), %s203_s11, 3 }
  0x17   : > { %s205_s15 = scalar_lea.vmem (%p47_p3), %s1186_s0, %s809_s12 }
  0x18   : > { %v240_v1 = vld [vmem:[%s205_s15] sm:$0xff]  ;;  %v242_v2 = vld [vmem:[%s205_s15 + $0x10] sm:$0xff] }
  0x19   : > { %v244_v3 = vld [vmem:[%s205_s15 + $0x20] sm:$0xff]  ;;  %241 = vst [vmem:[%s200_s16] sm:$0xff] %v240_v1  ;;  %v246_v4 = vld [vmem:[%s205_s15 + $0x30] sm:$0xff] }
  0x1a   : > { %243 = vst [vmem:[%s200_s16 + $0x8] sm:$0xff] %v242_v2 }
  0x1b   : > { %245 = vst [vmem:[%s200_s16 + $0x10] sm:$0xff] %v244_v3 }
  0x1c   : > { %247 = vst [vmem:[%s200_s16 + $0x18] sm:$0xff] %v246_v4 }
  0x1d PF: > { %p810_p7 = scmp.ge.s32.totalorder %s981_s26, 1  ;;  %p252_p8 = scmp.lt.s32.totalorder %s981_s26, 9 }
  0x1f   : > { %p253_p9 = pnand %p810_p7, %p252_p8 }
  0x20   : > { %s259_s17 = sand.u32 (!%p253_p9), 1, %s957_s20   ;;  %p286_p10 = scmp.lt.s32.totalorder (!%p253_p9), %s969_s23, 1 }
  0x21   : > { %256 = sbr.rel (%p253_p9) target bundleno = 2375 (0x947), region = 74  ;;  %s811_s18 = sshll.u32 (!%p253_p9), %s259_s17, 5 }
  0x22   : > { %s1090_s6 = scalar_lea.vmem (!%p253_p9), [#allocation4], %s811_s18  ;;  %p813_p11 = scmp.ne.s32.totalorder (!%p253_p9), %s965_s22, 0 }
  0x26   : > { %s1205_s23 = smov (!%p286_p10, %s969_s23), 1  ;;  %293 = sbr.rel (%p813_p11) target bundleno = 45 (0x2d), region = 82 }
  0x27   : > { %s812_s19 = sshll.u32 %s1205_s23, 3 }
  0x28   : > { %s1088_s30 = scalar_lea.vmem %s1191_s5, %s812_s19 }
  0x2b   : > { %vm294_vm0 = vcmask 261120   ;;  %v983_v5 = vmov 0.0  }
  0x2c   : > { %295 = vst.msk [vmem:[#allocation2] sm:$0xff] %vm294_vm0, %v983_v5 }
  0x2d PF: > { %v299_v6 = vld [vmem:[%s1187_s1 + $0x18] sm:$0xff]  ;;  %v298_v7 = vld [vmem:[%s1187_s1 + $0x10] sm:$0xff]  ;;  %v297_v9 = vld [vmem:[%s1187_s1 + $0x8] sm:$0xff]  ;;  %s984_s12 = smov 96   ;;  %s985_s15 = smov 32   ;;  %vm315_vm1 = vcmask 261120  }
  0x2e   : > { %331 = vmatpush.msra.mxu0 %v299_v6  ;;  %v305_v8 = vld [vmem:[%s1090_s6] sm:$0xff]  ;;  %427 = vmatpush.msra.mxu2 %v299_v6  ;;  %v296_v11 = vld [vmem:[%s1187_s1] sm:$0xff]  ;;  %v303_v17 = vld [vmem:[%s1188_s2 + $0x18] sm:$0xff]  ;;  %p829_p12 = scmp.ne.s32.totalorder %s965_s22, 3 }
  0x2f   : > { %v306_v10 = vmax.f32 %v305_v8, 0.0  ;;  %312 = vrot.lane.b32.xlu0 %v305_v8, %s984_s12  ;;  %v302_v18 = vld [vmem:[%s1188_s2 + $0x10] sm:$0xff]  ;;  %377 = vmatpush.msra.mxu1 %v303_v17  ;;  %v301_v19 = vld [vmem:[%s1188_s2 + $0x8] sm:$0xff]  ;;  %v300_v21 = vld [vmem:[%s1188_s2] sm:$0xff]  ;;  %s986_s11 = smov (!%p829_p12), 96  }
  0x30   : > { %332 = vmatpush.msra.mxu0 %v298_v7  ;;  %428 = vmatpush.msra.mxu2 %v298_v7  ;;  %v817_v42 = vld [vmem:[%s1090_s6 + $0x8] sm:$0xff] }
  0x31   : > { %v307_v12 = vsub.f32 0.0, %v306_v10  ;;  %473 = vmatpush.msra.mxu3 %v303_v17  ;;  %378 = vmatpush.msra.mxu1 %v302_v18  ;;  %v399_v49 = vmax.f32 %v817_v42, 0.0 }
  0x32   : > { %333 = vmatpush.msra.mxu0 %v297_v9  ;;  %429 = vmatpush.msra.mxu2 %v297_v9 }
  0x33   : > { %v308_v13 = vmul.f32 1.442695, %v307_v12  ;;  %v304_v14 = vld [vmem:[#allocation2] sm:$0xff]  ;;  %474 = vmatpush.msra.mxu3 %v302_v18  ;;  %379 = vmatpush.msra.mxu1 %v301_v19  ;;  %v400_v50 = vsub.f32 0.0, %v399_v49 }
  0x34   : > { %334 = vmatpush.msra.mxu0 %v296_v11  ;;  %430 = vmatpush.msra.mxu2 %v296_v11  ;;  %v821_v12 = vld [vmem:[%s1090_s6 + $0x10] sm:$0xff] }
  0x35   : > { %894 = vpow2.f32 %v308_v13  ;;  %475 = vmatpush.msra.mxu3 %v301_v19  ;;  %380 = vmatpush.msra.mxu1 %v300_v21  ;;  %v401_v51 = vmul.f32 1.442695, %v400_v50 }
  0x36   : > { %523 = vmatpush.msrb.mxu0 %v299_v6  ;;  %619 = vmatpush.msrb.mxu2 %v299_v6 }
  0x37   : > { %359 = vrot.lane.b32.xlu0 %v305_v8, %s985_s15  ;;  %476 = vmatpush.msra.mxu3 %v300_v21 }
  0x38   : > { %524 = vmatpush.msrb.mxu0 %v298_v7  ;;  %620 = vmatpush.msrb.mxu2 %v298_v7 }
  0x39   : > { %569 = vmatpush.msrb.mxu1 %v303_v17  ;;  %665 = vmatpush.msrb.mxu3 %v303_v17 }
  0x3a   : > { %525 = vmatpush.msrb.mxu0 %v297_v9  ;;  %621 = vmatpush.msrb.mxu2 %v297_v9 }
  0x3b   : > { %v895_v15 = vpop.eup %894  ;;  %570 = vmatpush.msrb.mxu1 %v302_v18  ;;  %666 = vmatpush.msrb.mxu3 %v302_v18 }
  0x3c   : > { %526 = vmatpush.msrb.mxu0 %v296_v11  ;;  %v310_v16 = vmul.f32 %v895_v15, %v304_v14  ;;  %622 = vmatpush.msrb.mxu2 %v296_v11 }
  0x3d   : > { %571 = vmatpush.msrb.mxu1 %v301_v19  ;;  %667 = vmatpush.msrb.mxu3 %v301_v19  ;;  %v495_v19 = vmax.f32 %v821_v12, 0.0 }
  0x3e   : > { %814 = vmatmul.msk.f32.vlgmr.msra.gmra.mxu0 %vm315_vm1, %v310_v16  ;;  %387 = vrot.lane.b32.xlu1 %v310_v16, %s985_s15 }
  0x3f   : > { %572 = vmatpush.msrb.mxu1 %v300_v21  ;;  %668 = vmatpush.msrb.mxu3 %v300_v21 }
  0x40   : > { %455 = vrot.lane.b32.xlu0 %v817_v42, %s985_s15 }
  0xa1   : > { %v313_v20 = vpop.permute.xlu0 %312 }
  0xa9   : > { %v360_v38 = vpop.permute.xlu0 %359 }
  0xb0   : > { %v388_v43 = vpop.permute.xlu1 %387 }
  0xb2   : > { %v456_v8 = vpop.permute.xlu0 %455 }
  0xbb   : > { %v336_v22 = vpop.f32.mrf.mxu0 }
  0xbc   : > { %v337_v23 = vadd.f32 %v336_v22, %v313_v20  ;;  %v496_v20 = vsub.f32 0.0, %v495_v19 }
  0xbe   : > { %v815_v24 = vmul.f32 -1.442695, %v337_v23  ;;  %v497_v21 = vmul.f32 1.442695, %v496_v20 }
  0xc0   : > { %896 = vpow2.f32 %v815_v24 }
  0xc6   : > { %v897_v25 = vpop.eup %896 }
  0xc7   : > { %v342_v26 = vadd.f32 1.0, %v897_v25 }
  0xc9   : > { %898 = vrcp.f32 %v342_v26  ;;  %v354_v30 = vand.u32 2147483648, %v342_v26  ;;  %v352_v32 = vand.u32 2147483647, %v342_v26  ;;  %vm348_vm3 = vweird.f32 %v342_v26 }
  0xcb   : > { %v355_v34 = vor.u32 1.1754944e-38, %v354_v30  ;;  %vm353_vm5 = vcmp.eq.f32.partialorder %v352_v32, 8.507059e+37 }
  0xcf   : > { %v899_v27 = vpop.eup %898 }
  0xd0   : > { %v344_v28 = vmul.f32 %v899_v27, %v342_v26  ;;  %vm349_vm2 = vweird.f32 %v899_v27 }
  0xd1   : > { %vm350_vm4 = vmor %vm348_vm3, %vm349_vm2 }
  0xd2   : > { %v345_v29 = vsub.f32 1.0, %v344_v28 }
  0xd4   : > { %v346_v31 = vmul.f32 %v899_v27, %v345_v29 }
  0xd6   : > { %v347_v33 = vadd.f32 %v899_v27, %v346_v31 }
  0xd8   : > { %v351_v35 = vsel %vm350_vm4, %v899_v27, %v347_v33 }
  0xd9   : > { %v356_v36 = vsel %vm353_vm5, %v355_v34, %v351_v35 }
  0xda   : > { %v358_v37 = vmul.f32 %v356_v36, %v310_v16  ;;  %v386_v44 = vsub.f32 1.0, %v356_v36 }
  0xdc   : > { %816 = vmatmul.msk.f32.vlgmr.msra.gmra.mxu1 %vm315_vm1, %v358_v37  ;;  %v390_v46 = vmul.f32 %v388_v43, %v386_v44 }
 0x159   : > { %v382_v39 = vpop.f32.mrf.mxu1 }
 0x15a   : > { %v383_v40 = vadd.f32 %v382_v39, %v360_v38 }
 0x15c   : > { %900 = vtanh.f32 %v383_v40 }
 0x15d   : > { %902 = vpow2.f32 %v401_v51 }
 0x162   : > { %v901_v41 = vpop.eup %900 }
 0x163   : > { %392 = vrot.lane.b32.xlu1 %v901_v41, %s985_s15  ;;  %v903_v52 = vpop.eup %902 }
 0x1d5   : > { %v393_v45 = vpop.permute.xlu1 %392 }
 0x1d6   : > { %v395_v47 = vmul.f32 %v393_v45, %v356_v36 }
 0x1d8   : > { %v396_v48 = vadd.f32 %v395_v47, %v390_v46  ;;  %v825_v46 = vld [vmem:[%s1090_s6 + $0x18] sm:$0xff] }
 0x1da   : > { %404 = vrot.lane.b32.xlu2 %v396_v48, %s984_s12 }
 0x1e2   : > { %409 = vrot.lane.b32.xlu2 %v817_v42, %s984_s12 }
 0x234   : > { %v405_v53 = vpop.permute.xlu2 %404 }
 0x235   : > { %v407_v54 = vmul.f32 %v903_v52, %v405_v53  ;;  %v591_v53 = vmax.f32 %v825_v46, 0.0 }
 0x237   : > { %483 = vrot.lane.b32.xlu1 %v407_v54, %s985_s15  ;;  %818 = vmatmul.msk.f32.vlgmr.msra.gmra.mxu2 %vm315_vm1, %v407_v54 }
 0x23c   : > { %v410_v55 = vpop.permute.xlu2 %409 }
 0x23f   : > { %505 = vrot.lane.b32.xlu1 %v821_v12, %s984_s12 }
 0x2a9   : > { %v484_v14 = vpop.permute.xlu1 %483 }
 0x2b1   : > { %v506_v25 = vpop.permute.xlu1 %505 }
 0x2ba   : > { %v432_v56 = vpop.f32.mrf.mxu2 }
 0x2bb   : > { %v433_v57 = vadd.f32 %v432_v56, %v410_v55 }
 0x2bd   : > { %v819_v58 = vmul.f32 -1.442695, %v433_v57 }
 0x2bf   : > { %904 = vpow2.f32 %v819_v58 }
 0x2c5   : > { %v905_v59 = vpop.eup %904 }
 0x2c6   : > { %v438_v60 = vadd.f32 1.0, %v905_v59 }
 0x2c8   : > { %906 = vrcp.f32 %v438_v60  ;;  %v450_v0 = vand.u32 2147483648, %v438_v60  ;;  %v448_v2 = vand.u32 2147483647, %v438_v60  ;;  %vm444_vm7 = vweird.f32 %v438_v60 }
 0x2ca   : > { %v451_v4 = vor.u32 1.1754944e-38, %v450_v0  ;;  %vm449_vm9 = vcmp.eq.f32.partialorder %v448_v2, 8.507059e+37 }
 0x2ce   : > { %v907_v61 = vpop.eup %906 }
 0x2cf   : > { %v440_v62 = vmul.f32 %v907_v61, %v438_v60  ;;  %vm445_vm6 = vweird.f32 %v907_v61 }
 0x2d0   : > { %vm446_vm8 = vmor %vm444_vm7, %vm445_vm6 }
 0x2d1   : > { %v441_v63 = vsub.f32 1.0, %v440_v62 }
 0x2d3   : > { %v442_v1 = vmul.f32 %v907_v61, %v441_v63 }
 0x2d5   : > { %v443_v3 = vadd.f32 %v907_v61, %v442_v1 }
 0x2d7   : > { %v447_v5 = vsel %vm446_vm8, %v907_v61, %v443_v3 }
 0x2d8   : > { %v452_v6 = vsel %vm449_vm9, %v451_v4, %v447_v5 }
 0x2d9   : > { %v454_v7 = vmul.f32 %v452_v6, %v407_v54  ;;  %v482_v13 = vsub.f32 1.0, %v452_v6  ;;  %v592_v54 = vsub.f32 0.0, %v591_v53 }
 0x2db   : > { %820 = vmatmul.msk.f32.vlgmr.msra.gmra.mxu3 %vm315_vm1, %v454_v7  ;;  %v486_v16 = vmul.f32 %v484_v14, %v482_v13  ;;  %v593_v55 = vmul.f32 1.442695, %v592_v54 }
 0x35e   : > { %v478_v9 = vpop.f32.mrf.mxu3 }
 0x35f   : > { %v479_v10 = vadd.f32 %v478_v9, %v456_v8 }
 0x361   : > { %908 = vtanh.f32 %v479_v10 }
 0x362   : > { %910 = vpow2.f32 %v497_v21 }
 0x367   : > { %v909_v11 = vpop.eup %908 }
 0x368   : > { %488 = vrot.lane.b32.xlu2 %v909_v11, %s985_s15  ;;  %v911_v22 = vpop.eup %910 }
 0x370   : > { %551 = vrot.lane.b32.xlu2 %v821_v12, %s985_s15 }
 0x3c2   : > { %v489_v15 = vpop.permute.xlu2 %488 }
 0x3c3   : > { %v491_v17 = vmul.f32 %v489_v15, %v452_v6 }
 0x3c5   : > { %v492_v18 = vadd.f32 %v491_v17, %v486_v16 }
 0x3c7   : > { %500 = vrot.lane.b32.xlu0 %v492_v18, %s984_s12 }
 0x3ca   : > { %v552_v42 = vpop.permute.xlu2 %551 }
 0x439   : > { %v501_v23 = vpop.permute.xlu0 %500 }
 0x43a   : > { %v503_v24 = vmul.f32 %v911_v22, %v501_v23 }
 0x43c   : > { %579 = vrot.lane.b32.xlu0 %v503_v24, %s985_s15  ;;  %822 = vmatmul.msk.f32.vlgmr.msrb.gmra.mxu0 %vm315_vm1, %v503_v24 }
 0x444   : > { %601 = vrot.lane.b32.xlu0 %v825_v46, %s984_s12 }
 0x4ae   : > { %v580_v48 = vpop.permute.xlu0 %579 }
 0x4b6   : > { %v602_v59 = vpop.permute.xlu0 %601 }
 0x4b9   : > { %v528_v26 = vpop.f32.mrf.mxu0 }
 0x4ba   : > { %v529_v27 = vadd.f32 %v528_v26, %v506_v25 }
 0x4bc   : > { %v823_v28 = vmul.f32 -1.442695, %v529_v27 }
 0x4be   : > { %912 = vpow2.f32 %v823_v28 }
 0x4c4   : > { %v913_v29 = vpop.eup %912 }
 0x4c5   : > { %v534_v30 = vadd.f32 1.0, %v913_v29 }
 0x4c7   : > { %914 = vrcp.f32 %v534_v30  ;;  %v546_v34 = vand.u32 2147483648, %v534_v30  ;;  %v544_v36 = vand.u32 2147483647, %v534_v30  ;;  %vm540_vm11 = vweird.f32 %v534_v30 }
 0x4c9   : > { %v547_v38 = vor.u32 1.1754944e-38, %v546_v34  ;;  %vm545_vm13 = vcmp.eq.f32.partialorder %v544_v36, 8.507059e+37 }
 0x4cd   : > { %v915_v31 = vpop.eup %914 }
 0x4ce   : > { %v536_v32 = vmul.f32 %v915_v31, %v534_v30  ;;  %vm541_vm10 = vweird.f32 %v915_v31 }
 0x4cf   : > { %vm542_vm12 = vmor %vm540_vm11, %vm541_vm10 }
 0x4d0   : > { %v537_v33 = vsub.f32 1.0, %v536_v32 }
 0x4d2   : > { %v538_v35 = vmul.f32 %v915_v31, %v537_v33 }
 0x4d4   : > { %v539_v37 = vadd.f32 %v915_v31, %v538_v35 }
 0x4d6   : > { %v543_v39 = vsel %vm542_vm12, %v915_v31, %v539_v37 }
 0x4d7   : > { %v548_v40 = vsel %vm545_vm13, %v547_v38, %v543_v39 }
 0x4d8   : > { %v550_v41 = vmul.f32 %v548_v40, %v503_v24  ;;  %v578_v47 = vsub.f32 1.0, %v548_v40 }
 0x4da   : > { %824 = vmatmul.msk.f32.vlgmr.msrb.gmra.mxu1 %vm315_vm1, %v550_v41  ;;  %v582_v50 = vmul.f32 %v580_v48, %v578_v47 }
 0x557   : > { %v574_v43 = vpop.f32.mrf.mxu1 }
 0x558   : > { %v575_v44 = vadd.f32 %v574_v43, %v552_v42 }
 0x55a   : > { %916 = vtanh.f32 %v575_v44 }
 0x55b   : > { %918 = vpow2.f32 %v593_v55 }
 0x560   : > { %v917_v45 = vpop.eup %916 }
 0x561   : > { %584 = vrot.lane.b32.xlu1 %v917_v45, %s985_s15  ;;  %v919_v56 = vpop.eup %918 }
 0x569   : > { %647 = vrot.lane.b32.xlu1 %v825_v46, %s985_s15 }
 0x5d3   : > { %v585_v49 = vpop.permute.xlu1 %584 }
 0x5d4   : > { %v587_v51 = vmul.f32 %v585_v49, %v548_v40 }
 0x5d6   : > { %v588_v52 = vadd.f32 %v587_v51, %v582_v50 }
 0x5d8   : > { %596 = vrot.lane.b32.xlu2 %v588_v52, %s984_s12 }
 0x5db   : > { %v648_v12 = vpop.permute.xlu1 %647 }
 0x632   : > { %v597_v57 = vpop.permute.xlu2 %596 }
 0x633   : > { %v599_v58 = vmul.f32 %v919_v56, %v597_v57 }
 0x635   : > { %675 = vrot.lane.b32.xlu2 %v599_v58, %s985_s15  ;;  %826 = vmatmul.msk.f32.vlgmr.msrb.gmra.mxu2 %vm315_vm1, %v599_v58 }
 0x68f   : > { %v676_v17 = vpop.permute.xlu2 %675 }
 0x6b8   : > { %v624_v60 = vpop.f32.mrf.mxu2 }
 0x6b9   : > { %v625_v61 = vadd.f32 %v624_v60, %v602_v59 }
 0x6bb   : > { %v827_v62 = vmul.f32 -1.442695, %v625_v61 }
 0x6bd   : > { %920 = vpow2.f32 %v827_v62 }
 0x6c3   : > { %v921_v63 = vpop.eup %920 }
 0x6c4   : > { %v630_v0 = vadd.f32 1.0, %v921_v63 }
 0x6c6   : > { %922 = vrcp.f32 %v630_v0  ;;  %v642_v4 = vand.u32 2147483648, %v630_v0  ;;  %v640_v6 = vand.u32 2147483647, %v630_v0  ;;  %vm636_vm15 = vweird.f32 %v630_v0 }
 0x6c8   : > { %v643_v8 = vor.u32 1.1754944e-38, %v642_v4  ;;  %vm641_vm2 = vcmp.eq.f32.partialorder %v640_v6, 8.507059e+37 }
 0x6cc   : > { %v923_v1 = vpop.eup %922 }
 0x6cd   : > { %v632_v2 = vmul.f32 %v923_v1, %v630_v0  ;;  %vm637_vm14 = vweird.f32 %v923_v1 }
 0x6ce   : > { %vm638_vm0 = vmor %vm636_vm15, %vm637_vm14 }
 0x6cf   : > { %v633_v3 = vsub.f32 1.0, %v632_v2 }
 0x6d1   : > { %v634_v5 = vmul.f32 %v923_v1, %v633_v3 }
 0x6d3   : > { %v635_v7 = vadd.f32 %v923_v1, %v634_v5 }
 0x6d5   : > { %v639_v9 = vsel %vm638_vm0, %v923_v1, %v635_v7 }
 0x6d6   : > { %v644_v10 = vsel %vm641_vm2, %v643_v8, %v639_v9 }
 0x6d7   : > { %v646_v11 = vmul.f32 %v644_v10, %v599_v58  ;;  %v674_v16 = vsub.f32 1.0, %v644_v10 }
 0x6d9   : > { %828 = vmatmul.msk.f32.vlgmr.msrb.gmra.mxu3 %vm315_vm1, %v646_v11  ;;  %v678_v19 = vmul.f32 %v676_v17, %v674_v16 }
 0x75c   : > { %v670_v13 = vpop.f32.mrf.mxu3 }
 0x75d   : > { %v671_v14 = vadd.f32 %v670_v13, %v648_v12 }
 0x75f   : > { %924 = vtanh.f32 %v671_v14 }
 0x765   : > { %v925_v15 = vpop.eup %924 }
 0x766   : > { %680 = vrot.lane.b32.xlu0 %v925_v15, %s985_s15 }
 0x7d8   : > { %v681_v18 = vpop.permute.xlu0 %680 }
 0x7d9   : > { %v683_v20 = vmul.f32 %v681_v18, %v644_v10 }
 0x7db   : > { %v684_v21 = vadd.f32 %v683_v20, %v678_v19 }
 0x7dd   : > { %686 = vrot.lane.b32.xlu1 %v684_v21, %s984_s12 }
 0x84c   : > { %693 = sbr.rel (%p829_p12) target bundleno = 2375 (0x947), region = 86 }
 0x84f   : > { %v687_v22 = vpop.permute.xlu1 %686 }
 0x850   : > { %689 = vst.msk [vmem:[#allocation2] sm:$0xff] %vm315_vm1, %v687_v22 }
 0x851   : > { %v694_v23 = vmax.f32 %v684_v21, 0.0  ;;  %v698_v24 = vld [vmem:[%s1189_s3 + $0x18] sm:$0xff]  ;;  %v697_v25 = vld [vmem:[%s1189_s3 + $0x10] sm:$0xff]  ;;  %v696_v26 = vld [vmem:[%s1189_s3 + $0x8] sm:$0xff]  ;;  %vm728_vm3 = vcmask 7168  }
 0x852   : > { %720 = vmatpush.msra.mxu0 %v698_v24  ;;  %v695_v27 = vld [vmem:[%s1189_s3] sm:$0xff]  ;;  %v926_v29 = vld [vmem:[#allocation3] ss:$0 sm:$0xff] }
 0x853   : > { %704 = vrot.lane.b32.xlu0 %v694_v23, %s986_s11 }
 0x854   : > { %721 = vmatpush.msra.mxu0 %v697_v25 }
 0x856   : > { %722 = vmatpush.msra.mxu0 %v696_v26 }
 0x858   : > { %723 = vmatpush.msra.mxu0 %v695_v27 }
 0x8c5   : > { %v705_v28 = vpop.permute.xlu0 %704 }
 0x8c6   : > { %830 = vmatmul.msk.f32.vlgmr.msra.gmra.mxu0 %vm315_vm1, %v705_v28 }
 0x943   : > { %v725_v30 = vpop.f32.mrf.mxu0 }
 0x944   : > { %v726_v31 = vadd.f32 %v926_v29, %v725_v30 }
 0x946   : > { %729 = vst.msk [vmem:[%s1088_s30] sm:$0xff] %vm728_vm3, %v726_v31 }
 0x947 PF: > { %s17_s26 = sadd.s32 1, %s981_s26   ;;  %s1192_s20 = smov %s961_s21 }
 0x948   : > { %p14_p13 = scmp.ge.s32.totalorder %s17_s26, 10   ;;  %s1193_s21 = smov %s1071_s7 }
 0x949   : > { %s1194_s22 = smov %s973_s24  ;;  %s1195_s23 = smov %s977_s25 }
 0x94a   : > { %s1196_s24 = smov %s1199_s4  ;;  %s1197_s25 = smov %s1203_s27 }
 0x94b   :  { %16 = sbr.rel (!%p14_p13) target bundleno = 7 (0x7), region = 124 }

</bundles_post_ra>
